<compile_context>
chip_gen: v6e
topology: v6e:2x2x1
jax: 0.10.0
libtpu: 0.0.40
codegen_flags: <defaults>
</compile_context>

<pallas_src>
import functools

import jax
import jax.numpy as jnp
from jax.experimental import pallas as pl
from jax.experimental.pallas import tpu as pltpu

EPS = 1e-5
NEG_SLOPE = 0.1  # nn.LeakyReLU(0.1)


def _leaky(x):
    return jnp.where(x > 0, x, NEG_SLOPE * x)


def _compiler_params(block_bytes):
    # Raise the scoped VMEM limit explicitly (v5e default 16 MiB, v7x 32 MiB),
    # but stay well under v7x's 64 MiB physical VMEM.
    limit = int(min(max(4 * block_bytes + (4 << 20), 16 << 20), 48 << 20))
    return pltpu.CompilerParams(dimension_semantics=("parallel",),
                                vmem_limit_bytes=limit)


# ----------------- kernel A: conv1 (1x1) + per-image BN1 partial stats -------
def _conv1_stats_kernel(x_ref, w1_ref, y1_ref, s1_ref, q1_ref):
    # x_ref: (1, C, HW) f32   w1_ref: (Ch, C) matmul dtype
    # y1_ref: (1, Ch, HW) f32 s1/q1: (1, Ch, 1) f32 partial stats
    a = jnp.dot(w1_ref[...], x_ref[0].astype(w1_ref.dtype),
                preferred_element_type=jnp.float32)            # (Ch, HW) f32
    y1_ref[0] = a
    s1_ref[0] = jnp.sum(a, axis=1, keepdims=True)
    q1_ref[0] = jnp.sum(a * a, axis=1, keepdims=True)


# ------- kernel B: BN1 apply + leaky -> conv2 (3x3 via 9 stacked taps) -------
def _conv2_stats_kernel(y1_ref, sc1_ref, sh1_ref, w2_ref, mask_ref,
                        z2_ref, s2_ref, q2_ref, *, W):
    # y1_ref : (1, Ch, HW) f32     sc1/sh1 : (Ch, 1) f32
    # w2_ref : (C, 9*Ch) matmul dtype   mask_ref : (9, 1, HW) f32
    # z2_ref : (1, C, HW) f32      s2/q2 : (1, C, 1) f32 partial stats
    HW = y1_ref.shape[2]
    a = _leaky(y1_ref[0] * sc1_ref[...] + sh1_ref[...])        # (Ch, HW) f32

    patches = []
    for k in range(9):                                          # 9 taps, 1 matmul
        dy, dx = k // 3 - 1, k % 3 - 1
        if dy == 0 and dx == 0:
            patches.append(a)                                   # centre: no halo
        else:
            shift = (-(dy * W + dx)) % HW                       # static int; XLU roll
            patches.append(pltpu.roll(a, shift=shift, axis=1) * mask_ref[k])
    p = jnp.concatenate(patches, axis=0).astype(w2_ref.dtype)   # (9*Ch, HW)

    z = jnp.dot(w2_ref[...], p, preferred_element_type=jnp.float32)  # (C, HW)
    z2_ref[0] = z
    s2_ref[0] = jnp.sum(z, axis=1, keepdims=True)
    q2_ref[0] = jnp.sum(z * z, axis=1, keepdims=True)


# ----------------- kernel C: BN2 apply + leaky + residual add ----------------
def _bn2_res_kernel(z2_ref, x_ref, sc2_ref, sh2_ref, out_ref):
    out_ref[0] = (_leaky(z2_ref[0] * sc2_ref[...] + sh2_ref[...])
                  + x_ref[0]).astype(out_ref.dtype)


def resblock(x_nchw, w1, w2, g1, b1, g2, b2, *, matmul_dtype=jnp.bfloat16):
    """x_nchw: (N, C, H, W) f32.  w1: (C//2, C, 1, 1), w2: (C, C//2, 3, 3)."""
    N, C, H, W = x_nchw.shape
    Ch = C // 2
    assert C % 2 == 0
    assert w1.shape == (Ch, C, 1, 1) and w2.shape == (C, Ch, 3, 3)
    HW = H * W
    # Lane-dense stores (unmasked vst) require H*W to be a multiple of 128.
    # TODO(synk): pad HW / tile with halo exchange for other shapes.
    assert HW % 128 == 0, "H*W must be a multiple of 128 for lane-dense layout"

    f32 = jnp.float32
    msz = jnp.dtype(matmul_dtype).itemsize
    x = x_nchw.reshape(N, C, HW).astype(f32)
    w1r = w1.reshape(Ch, C).astype(matmul_dtype)
    # (C, Ch, 3, 3) -> (C, ky, kx, Ch) -> (C, 9*Ch): contraction over stacked taps.
    w2s = jnp.transpose(w2, (0, 2, 3, 1)).reshape(C, 9 * Ch).astype(matmul_dtype)
    g1r = g1.reshape(Ch, 1).astype(f32)
    b1r = b1.reshape(Ch, 1).astype(f32)
    g2r = g2.reshape(C, 1).astype(f32)
    b2r = b2.reshape(C, 1).astype(f32)

    # Halo masks for the 8 off-centre taps, precomputed once as f32 multipliers.
    hh = jnp.arange(HW, dtype=jnp.int32) // W
    ww = jnp.arange(HW, dtype=jnp.int32) % W
    masks = []
    for k in range(9):
        dy, dx = k // 3 - 1, k % 3 - 1
        m = ((hh + dy >= 0) & (hh + dy < H) & (ww + dx >= 0) & (ww + dx < W))
        masks.append(m.astype(f32))
    mask_arr = jnp.stack(masks).reshape(9, 1, HW)

    cnt = float(N * HW)

    # -------- pass 1: conv1 (1x1) + BN1 partial stats, grid over N ------------
    blkA = (C * HW + Ch * HW + 2 * Ch) * 4 + Ch * C * msz
    y1, s1p, q1p = pl.pallas_call(
        _conv1_stats_kernel,
        grid=(N,),
        in_specs=[
            pl.BlockSpec((1, C, HW), lambda n: (n, 0, 0)),
            pl.BlockSpec((Ch, C), lambda n: (0, 0)),
        ],
        out_specs=[
            pl.BlockSpec((1, Ch, HW), lambda n: (n, 0, 0)),
            pl.BlockSpec((1, Ch, 1), lambda n: (n, 0, 0)),
            pl.BlockSpec((1, Ch, 1), lambda n: (n, 0, 0)),
        ],
        out_shape=[
            jax.ShapeDtypeStruct((N, Ch, HW), f32),
            jax.ShapeDtypeStruct((N, Ch, 1), f32),
            jax.ShapeDtypeStruct((N, Ch, 1), f32),
        ],
        compiler_params=_compiler_params(blkA),
        cost_estimate=pl.CostEstimate(
            flops=2 * N * Ch * C * HW, transcendentals=0,
            bytes_accessed=N * (C + Ch) * HW * 4 + Ch * C * msz),
    )(x, w1r)

    # Tiny BN1 finalize (per-channel fold into scale/shift).
    mean1 = jnp.sum(s1p, axis=0) / cnt                      # (Ch, 1)
    var1 = jnp.sum(q1p, axis=0) / cnt - mean1 * mean1
    scale1 = g1r * jax.lax.rsqrt(var1 + EPS)
    shift1 = b1r - mean1 * scale1

    # -------- pass 2: BN1+leaky -> conv2 (3x3) + BN2 partial stats ------------
    blkB = ((Ch + C) * HW + 2 * Ch + 2 * C + 9 * HW) * 4 + 9 * C * Ch * msz
    z2, s2p, q2p = pl.pallas_call(
        functools.partial(_conv2_stats_kernel, W=W),
        grid=(N,),
        in_specs=[
            pl.BlockSpec((1, Ch, HW), lambda n: (n, 0, 0)),
            pl.BlockSpec((Ch, 1), lambda n: (0, 0)),
            pl.BlockSpec((Ch, 1), lambda n: (0, 0)),
            pl.BlockSpec((C, 9 * Ch), lambda n: (0, 0)),
            pl.BlockSpec((9, 1, HW), lambda n: (0, 0, 0)),
        ],
        out_specs=[
            pl.BlockSpec((1, C, HW), lambda n: (n, 0, 0)),
            pl.BlockSpec((1, C, 1), lambda n: (n, 0, 0)),
            pl.BlockSpec((1, C, 1), lambda n: (n, 0, 0)),
        ],
        out_shape=[
            jax.ShapeDtypeStruct((N, C, HW), f32),
            jax.ShapeDtypeStruct((N, C, 1), f32),
            jax.ShapeDtypeStruct((N, C, 1), f32),
        ],
        compiler_params=_compiler_params(blkB),
        cost_estimate=pl.CostEstimate(
            flops=2 * N * C * 9 * Ch * HW + 12 * N * Ch * HW, transcendentals=0,
            bytes_accessed=N * (Ch + C) * HW * 4 + 9 * C * Ch * msz + 9 * HW * 4),
    )(y1, scale1, shift1, w2s, mask_arr)

    # Tiny BN2 finalize.
    mean2 = jnp.sum(s2p, axis=0) / cnt                      # (C, 1)
    var2 = jnp.sum(q2p, axis=0) / cnt - mean2 * mean2
    scale2 = g2r * jax.lax.rsqrt(var2 + EPS)
    shift2 = b2r - mean2 * scale2

    # -------- pass 3: BN2 apply + leaky + residual add -------------------------
    blkC = (3 * C * HW + 2 * C) * 4
    out = pl.pallas_call(
        _bn2_res_kernel,
        grid=(N,),
        in_specs=[
            pl.BlockSpec((1, C, HW), lambda n: (n, 0, 0)),
            pl.BlockSpec((1, C, HW), lambda n: (n, 0, 0)),
            pl.BlockSpec((C, 1), lambda n: (0, 0)),
            pl.BlockSpec((C, 1), lambda n: (0, 0)),
        ],
        out_specs=pl.BlockSpec((1, C, HW), lambda n: (n, 0, 0)),
        out_shape=jax.ShapeDtypeStruct((N, C, HW), f32),
        compiler_params=_compiler_params(blkC),
        cost_estimate=pl.CostEstimate(
            flops=4 * N * C * HW, transcendentals=0,
            bytes_accessed=3 * N * C * HW * 4),
    )(z2, x, scale2, shift2)

    return out.reshape(N, C, H, W).astype(x_nchw.dtype)


# ----------------------------- pure-JAX reference ----------------------------
def _reference(x, w1, w2, g1, b1, g2, b2):
    hp = jax.lax.Precision.HIGHEST

    def conv(y, w, pad):
        return jax.lax.conv_general_dilated(
            y, w, window_strides=(1, 1), padding=pad,
            dimension_numbers=("NCHW", "OIHW", "NCHW"), precision=hp)

    def bn(y, g, b):  # training-mode batch stats, biased variance
        m = jnp.mean(y, axis=(0, 2, 3), keepdims=True)
        v = jnp.mean((y - m) ** 2, axis=(0, 2, 3), keepdims=True)
        return (y - m) * jax.lax.rsqrt(v + EPS) * g.reshape(1, -1, 1, 1) \
            + b.reshape(1, -1, 1, 1)

    out = _leaky(bn(conv(x, w1, ((0, 0), (0, 0))), g1, b1))
    out = _leaky(bn(conv(out, w2, ((1, 1), (1, 1))), g2, b2))
    return out + x


if __name__ == "__main__":
    N, C, H, W = 2, 8, 16, 16          # in_channels must be even
    Ch = C // 2
    key = jax.random.PRNGKey(0)
    kx, k1, k2, kg1, kb1, kg2, kb2 = jax.random.split(key, 7)

    x = jax.random.normal(kx, (N, C, H, W), jnp.float32)
    w1 = jax.random.normal(k1, (Ch, C, 1, 1), jnp.float32) * 0.3   # conv1 1x1
    w2 = jax.random.normal(k2, (C, Ch, 3, 3), jnp.float32) * 0.1   # conv2 3x3
    g1 = 1.0 + 0.1 * jax.random.normal(kg1, (Ch,), jnp.float32)    # bn1 gamma
    b1 = 0.1 * jax.random.normal(kb1, (Ch,), jnp.float32)          # bn1 beta
    g2 = 1.0 + 0.1 * jax.random.normal(kg2, (C,), jnp.float32)     # bn2 gamma
    b2 = 0.1 * jax.random.normal(kb2, (C,), jnp.float32)           # bn2 beta

    ref = jax.block_until_ready(_reference(x, w1, w2, g1, b1, g2, b2))

    # Exact-precision path (f32 MXU operands): tight tolerance.
    run_f32 = jax.jit(functools.partial(resblock, matmul_dtype=jnp.float32))
    out_f32 = jax.block_until_ready(run_f32(x, w1, w2, g1, b1, g2, b2))
    assert out_f32.shape == (N, C, H, W)
    err_f32 = jnp.max(jnp.abs(out_f32 - ref))
    assert jnp.allclose(out_f32, ref, atol=2e-3, rtol=2e-3), f"f32 err {err_f32}"

    # Fast path (bf16 MXU operands, f32 accumulation): re-validated tolerance.
    run_bf16 = jax.jit(functools.partial(resblock, matmul_dtype=jnp.bfloat16))
    out_bf16 = jax.block_until_ready(run_bf16(x, w1, w2, g1, b1, g2, b2))
    err_bf16 = jnp.max(jnp.abs(out_bf16 - ref))
    assert jnp.allclose(out_bf16, ref, atol=7.5e-2, rtol=7.5e-2), \
        f"bf16 err {err_bf16}"

    print("KERNEL_OK")
</pallas_src>

<mosaic_0001>
module attributes {stable_mosaic.version = 11 : i64} {
  func.func @_conv1_stats_kernel(%arg0: i32, %arg1: memref<1x8x256xf32, #tpu.memory_space<vmem>>, %arg2: memref<4x8xf32, #tpu.memory_space<vmem>>, %arg3: memref<1x4x256xf32, #tpu.memory_space<vmem>>, %arg4: memref<1x4x1xf32, #tpu.memory_space<vmem>>, %arg5: memref<1x4x1xf32, #tpu.memory_space<vmem>>) attributes {dimension_semantics = [#tpu.dimension_semantics<parallel>], iteration_bounds = array<i64: 2>, scalar_prefetch = 0 : i64, scratch_operands = 0 : i64, tpu.core_type = #tpu.core_type<tc>, window_params = [{transform_indices = @transform_0, window_bounds = array<i64: 1, 8, 256>}, {pipeline_mode = #tpu.pipeline_mode<synchronous>, transform_indices = @transform_1, window_bounds = array<i64: 4, 8>}, {transform_indices = @transform_2, window_bounds = array<i64: 1, 4, 256>}, {transform_indices = @transform_3, window_bounds = array<i64: 1, 4, 1>}, {transform_indices = @transform_4, window_bounds = array<i64: 1, 4, 1>}]} {
    %c0 = arith.constant 0 : index
    %c0_0 = arith.constant 0 : index
    %0 = vector.load %arg2[%c0, %c0_0] : memref<4x8xf32, #tpu.memory_space<vmem>>, vector<4x8xf32>
    %c0_1 = arith.constant 0 : index
    %c0_2 = arith.constant 0 : index
    %c0_3 = arith.constant 0 : index
    %1 = vector.load %arg1[%c0_1, %c0_2, %c0_3] : memref<1x8x256xf32, #tpu.memory_space<vmem>>, vector<1x8x256xf32>
    %2 = vector.shape_cast %1 : vector<1x8x256xf32> to vector<8x256xf32>
    %cst = arith.constant dense<0.000000e+00> : vector<4x256xf32>
    %3 = tpu.matmul %0, %2, %cst {dimension_numbers = #tpu.dot_dimension_numbers<[1], [0], [0], [1], [0, 0, 1, 1], [], []>} : vector<4x8xf32>, vector<8x256xf32>, vector<4x256xf32> -> vector<4x256xf32>
    %c0_4 = arith.constant 0 : index
    %c0_5 = arith.constant 0 : index
    %c0_6 = arith.constant 0 : index
    %4 = vector.load %arg3[%c0_4, %c0_5, %c0_6] : memref<1x4x256xf32, #tpu.memory_space<vmem>>, vector<1x4x256xf32>
    %5 = vector.shape_cast %4 : vector<1x4x256xf32> to vector<4x256xf32>
    %6 = vector.shape_cast %3 : vector<4x256xf32> to vector<1x4x256xf32>
    tpu.vector_store %arg3[%c0_4, %c0_5, %c0_6], %6 {strides = array<i32>} : memref<1x4x256xf32, #tpu.memory_space<vmem>>, vector<1x4x256xf32>,
    %cst_7 = arith.constant dense<0.000000e+00> : vector<4xf32>
    %7 = vector.multi_reduction <add>, %3, %cst_7 [1] : vector<4x256xf32> to vector<4xf32>
    %8 = vector.shape_cast %7 : vector<4xf32> to vector<4x1xf32>
    %c0_8 = arith.constant 0 : index
    %c0_9 = arith.constant 0 : index
    %c0_10 = arith.constant 0 : index
    %9 = vector.load %arg4[%c0_8, %c0_9, %c0_10] : memref<1x4x1xf32, #tpu.memory_space<vmem>>, vector<1x4x1xf32>
    %10 = vector.shape_cast %9 : vector<1x4x1xf32> to vector<4x1xf32>
    %11 = vector.shape_cast %8 : vector<4x1xf32> to vector<1x4x1xf32>
    tpu.vector_store %arg4[%c0_8, %c0_9, %c0_10], %11 {strides = array<i32>} : memref<1x4x1xf32, #tpu.memory_space<vmem>>, vector<1x4x1xf32>,
    %12 = arith.mulf %3, %3 : vector<4x256xf32>
    %cst_11 = arith.constant dense<0.000000e+00> : vector<4xf32>
    %13 = vector.multi_reduction <add>, %12, %cst_11 [1] : vector<4x256xf32> to vector<4xf32>
    %14 = vector.shape_cast %13 : vector<4xf32> to vector<4x1xf32>
    %c0_12 = arith.constant 0 : index
    %c0_13 = arith.constant 0 : index
    %c0_14 = arith.constant 0 : index
    %15 = vector.load %arg5[%c0_12, %c0_13, %c0_14] : memref<1x4x1xf32, #tpu.memory_space<vmem>>, vector<1x4x1xf32>
    %16 = vector.shape_cast %15 : vector<1x4x1xf32> to vector<4x1xf32>
    %17 = vector.shape_cast %14 : vector<4x1xf32> to vector<1x4x1xf32>
    tpu.vector_store %arg5[%c0_12, %c0_13, %c0_14], %17 {strides = array<i32>} : memref<1x4x1xf32, #tpu.memory_space<vmem>>, vector<1x4x1xf32>,
    return
  }
  func.func @transform_0(%arg0: i32) -> (i32, i32, i32) {
    %c0_i32 = arith.constant 0 : i32
    %c0_i32_0 = arith.constant 0 : i32
    %c0_i32_1 = arith.constant 0 : i32
    return %arg0, %c0_i32, %c0_i32_0 : i32, i32, i32
  }
  func.func @transform_1(%arg0: i32) -> (i32, i32) {
    %c0_i32 = arith.constant 0 : i32
    %c0_i32_0 = arith.constant 0 : i32
    %c0_i32_1 = arith.constant 0 : i32
    return %c0_i32, %c0_i32_0 : i32, i32
  }
  func.func @transform_2(%arg0: i32) -> (i32, i32, i32) {
    %c0_i32 = arith.constant 0 : i32
    %c0_i32_0 = arith.constant 0 : i32
    %c0_i32_1 = arith.constant 0 : i32
    return %arg0, %c0_i32, %c0_i32_0 : i32, i32, i32
  }
  func.func @transform_3(%arg0: i32) -> (i32, i32, i32) {
    %c0_i32 = arith.constant 0 : i32
    %c0_i32_0 = arith.constant 0 : i32
    %c0_i32_1 = arith.constant 0 : i32
    return %arg0, %c0_i32, %c0_i32_0 : i32, i32, i32
  }
  func.func @transform_4(%arg0: i32) -> (i32, i32, i32) {
    %c0_i32 = arith.constant 0 : i32
    %c0_i32_0 = arith.constant 0 : i32
    %c0_i32_1 = arith.constant 0 : i32
    return %arg0, %c0_i32, %c0_i32_0 : i32, i32, i32
  }
}

module attributes {stable_mosaic.version = 11 : i64} {
  func.func @_bn2_res_kernel(%arg0: i32, %arg1: memref<1x8x256xf32, #tpu.memory_space<vmem>>, %arg2: memref<1x8x256xf32, #tpu.memory_space<vmem>>, %arg3: memref<8x1xf32, #tpu.memory_space<vmem>>, %arg4: memref<8x1xf32, #tpu.memory_space<vmem>>, %arg5: memref<1x8x256xf32, #tpu.memory_space<vmem>>) attributes {dimension_semantics = [#tpu.dimension_semantics<parallel>], iteration_bounds = array<i64: 2>, scalar_prefetch = 0 : i64, scratch_operands = 0 : i64, tpu.core_type = #tpu.core_type<tc>, window_params = [{transform_indices = @transform_0, window_bounds = array<i64: 1, 8, 256>}, {transform_indices = @transform_1, window_bounds = array<i64: 1, 8, 256>}, {pipeline_mode = #tpu.pipeline_mode<synchronous>, transform_indices = @transform_2, window_bounds = array<i64: 8, 1>}, {pipeline_mode = #tpu.pipeline_mode<synchronous>, transform_indices = @transform_3, window_bounds = array<i64: 8, 1>}, {transform_indices = @transform_4, window_bounds = array<i64: 1, 8, 256>}]} {
    %c0 = arith.constant 0 : index
    %c0_0 = arith.constant 0 : index
    %c0_1 = arith.constant 0 : index
    %0 = vector.load %arg1[%c0, %c0_0, %c0_1] : memref<1x8x256xf32, #tpu.memory_space<vmem>>, vector<1x8x256xf32>
    %1 = vector.shape_cast %0 : vector<1x8x256xf32> to vector<8x256xf32>
    %c0_2 = arith.constant 0 : index
    %c0_3 = arith.constant 0 : index
    %2 = vector.load %arg3[%c0_2, %c0_3] : memref<8x1xf32, #tpu.memory_space<vmem>>, vector<8x1xf32>
    %3 = vector.broadcast %2 : vector<8x1xf32> to vector<8x256xf32>
    %4 = arith.mulf %1, %3 : vector<8x256xf32>
    %c0_4 = arith.constant 0 : index
    %c0_5 = arith.constant 0 : index
    %5 = vector.load %arg4[%c0_4, %c0_5] : memref<8x1xf32, #tpu.memory_space<vmem>>, vector<8x1xf32>
    %6 = vector.broadcast %5 : vector<8x1xf32> to vector<8x256xf32>
    %7 = arith.addf %4, %6 : vector<8x256xf32>
    %cst = arith.constant 0.000000e+00 : f32
    %8 = vector.broadcast %cst : f32 to vector<8x256xf32>
    %9 = arith.cmpf ogt, %7, %8 : vector<8x256xf32>
    %cst_6 = arith.constant 1.000000e-01 : f32
    %10 = vector.broadcast %cst_6 : f32 to vector<8x256xf32>
    %11 = arith.mulf %10, %7 : vector<8x256xf32>
    %12 = arith.select %9, %7, %11 : vector<8x256xi1>, vector<8x256xf32>
    %c0_7 = arith.constant 0 : index
    %c0_8 = arith.constant 0 : index
    %c0_9 = arith.constant 0 : index
    %13 = vector.load %arg2[%c0_7, %c0_8, %c0_9] : memref<1x8x256xf32, #tpu.memory_space<vmem>>, vector<1x8x256xf32>
    %14 = vector.shape_cast %13 : vector<1x8x256xf32> to vector<8x256xf32>
    %15 = arith.addf %12, %14 : vector<8x256xf32>
    %c0_10 = arith.constant 0 : index
    %c0_11 = arith.constant 0 : index
    %c0_12 = arith.constant 0 : index
    %16 = vector.load %arg5[%c0_10, %c0_11, %c0_12] : memref<1x8x256xf32, #tpu.memory_space<vmem>>, vector<1x8x256xf32>
    %17 = vector.shape_cast %16 : vector<1x8x256xf32> to vector<8x256xf32>
    %18 = vector.shape_cast %15 : vector<8x256xf32> to vector<1x8x256xf32>
    tpu.vector_store %arg5[%c0_10, %c0_11, %c0_12], %18 {strides = array<i32>} : memref<1x8x256xf32, #tpu.memory_space<vmem>>, vector<1x8x256xf32>,
    return
  }
  func.func @transform_0(%arg0: i32) -> (i32, i32, i32) {
    %c0_i32 = arith.constant 0 : i32
    %c0_i32_0 = arith.constant 0 : i32
    %c0_i32_1 = arith.constant 0 : i32
    return %arg0, %c0_i32, %c0_i32_0 : i32, i32, i32
  }
  func.func @transform_1(%arg0: i32) -> (i32, i32, i32) {
    %c0_i32 = arith.constant 0 : i32
    %c0_i32_0 = arith.constant 0 : i32
    %c0_i32_1 = arith.constant 0 : i32
    return %arg0, %c0_i32, %c0_i32_0 : i32, i32, i32
  }
  func.func @transform_2(%arg0: i32) -> (i32, i32) {
    %c0_i32 = arith.constant 0 : i32
    %c0_i32_0 = arith.constant 0 : i32
    %c0_i32_1 = arith.constant 0 : i32
    return %c0_i32, %c0_i32_0 : i32, i32
  }
  func.func @transform_3(%arg0: i32) -> (i32, i32) {
    %c0_i32 = arith.constant 0 : i32
    %c0_i32_0 = arith.constant 0 : i32
    %c0_i32_1 = arith.constant 0 : i32
    return %c0_i32, %c0_i32_0 : i32, i32
  }
  func.func @transform_4(%arg0: i32) -> (i32, i32, i32) {
    %c0_i32 = arith.constant 0 : i32
    %c0_i32_0 = arith.constant 0 : i32
    %c0_i32_1 = arith.constant 0 : i32
    return %arg0, %c0_i32, %c0_i32_0 : i32, i32, i32
  }
}

module attributes {stable_mosaic.version = 11 : i64} {
  func.func @_conv2_stats_kernel(%arg0: i32, %arg1: memref<1x4x256xf32, #tpu.memory_space<vmem>>, %arg2: memref<4x1xf32, #tpu.memory_space<vmem>>, %arg3: memref<4x1xf32, #tpu.memory_space<vmem>>, %arg4: memref<8x36xf32, #tpu.memory_space<vmem>>, %arg5: memref<9x1x256xf32, #tpu.memory_space<vmem>>, %arg6: memref<1x8x256xf32, #tpu.memory_space<vmem>>, %arg7: memref<1x8x1xf32, #tpu.memory_space<vmem>>, %arg8: memref<1x8x1xf32, #tpu.memory_space<vmem>>) attributes {dimension_semantics = [#tpu.dimension_semantics<parallel>], iteration_bounds = array<i64: 2>, scalar_prefetch = 0 : i64, scratch_operands = 0 : i64, tpu.core_type = #tpu.core_type<tc>, window_params = [{transform_indices = @transform_0, window_bounds = array<i64: 1, 4, 256>}, {pipeline_mode = #tpu.pipeline_mode<synchronous>, transform_indices = @transform_1, window_bounds = array<i64: 4, 1>}, {pipeline_mode = #tpu.pipeline_mode<synchronous>, transform_indices = @transform_2, window_bounds = array<i64: 4, 1>}, {pipeline_mode = #tpu.pipeline_mode<synchronous>, transform_indices = @transform_3, window_bounds = array<i64: 8, 36>}, {pipeline_mode = #tpu.pipeline_mode<synchronous>, transform_indices = @transform_4, window_bounds = array<i64: 9, 1, 256>}, {transform_indices = @transform_5, window_bounds = array<i64: 1, 8, 256>}, {transform_indices = @transform_6, window_bounds = array<i64: 1, 8, 1>}, {transform_indices = @transform_7, window_bounds = array<i64: 1, 8, 1>}]} {
    %c0 = arith.constant 0 : index
    %c0_0 = arith.constant 0 : index
    %c0_1 = arith.constant 0 : index
    %0 = vector.load %arg1[%c0, %c0_0, %c0_1] : memref<1x4x256xf32, #tpu.memory_space<vmem>>, vector<1x4x256xf32>
    %1 = vector.shape_cast %0 : vector<1x4x256xf32> to vector<4x256xf32>
    %c0_2 = arith.constant 0 : index
    %c0_3 = arith.constant 0 : index
    %2 = vector.load %arg2[%c0_2, %c0_3] : memref<4x1xf32, #tpu.memory_space<vmem>>, vector<4x1xf32>
    %3 = vector.broadcast %2 : vector<4x1xf32> to vector<4x256xf32>
    %4 = arith.mulf %1, %3 : vector<4x256xf32>
    %c0_4 = arith.constant 0 : index
    %c0_5 = arith.constant 0 : index
    %5 = vector.load %arg3[%c0_4, %c0_5] : memref<4x1xf32, #tpu.memory_space<vmem>>, vector<4x1xf32>
    %6 = vector.broadcast %5 : vector<4x1xf32> to vector<4x256xf32>
    %7 = arith.addf %4, %6 : vector<4x256xf32>
    %cst = arith.constant 0.000000e+00 : f32
    %8 = vector.broadcast %cst : f32 to vector<4x256xf32>
    %9 = arith.cmpf ogt, %7, %8 : vector<4x256xf32>
    %cst_6 = arith.constant 1.000000e-01 : f32
    %10 = vector.broadcast %cst_6 : f32 to vector<4x256xf32>
    %11 = arith.mulf %10, %7 : vector<4x256xf32>
    %12 = arith.select %9, %7, %11 : vector<4x256xi1>, vector<4x256xf32>
    %c17_i32 = arith.constant 17 : i32
    %13 = tpu.dynamic_rotate %12 by %c17_i32 dim 1 : vector<4x256xf32>, i32 -> vector<4x256xf32>
    %c0_7 = arith.constant 0 : index
    %c0_8 = arith.constant 0 : index
    %c0_9 = arith.constant 0 : index
    %14 = vector.load %arg5[%c0_7, %c0_8, %c0_9] : memref<9x1x256xf32, #tpu.memory_space<vmem>>, vector<1x1x256xf32>
    %15 = vector.shape_cast %14 : vector<1x1x256xf32> to vector<1x256xf32>
    %16 = vector.broadcast %15 : vector<1x256xf32> to vector<4x256xf32>
    %17 = arith.mulf %13, %16 : vector<4x256xf32>
    %c16_i32 = arith.constant 16 : i32
    %18 = tpu.dynamic_rotate %12 by %c16_i32 dim 1 : vector<4x256xf32>, i32 -> vector<4x256xf32>
    %c1 = arith.constant 1 : index
    %c0_10 = arith.constant 0 : index
    %c0_11 = arith.constant 0 : index
    %19 = vector.load %arg5[%c1, %c0_10, %c0_11] : memref<9x1x256xf32, #tpu.memory_space<vmem>>, vector<1x1x256xf32>
    %20 = vector.shape_cast %19 : vector<1x1x256xf32> to vector<1x256xf32>
    %21 = vector.broadcast %20 : vector<1x256xf32> to vector<4x256xf32>
    %22 = arith.mulf %18, %21 : vector<4x256xf32>
    %c15_i32 = arith.constant 15 : i32
    %23 = tpu.dynamic_rotate %12 by %c15_i32 dim 1 : vector<4x256xf32>, i32 -> vector<4x256xf32>
    %c2 = arith.constant 2 : index
    %c0_12 = arith.constant 0 : index
    %c0_13 = arith.constant 0 : index
    %24 = vector.load %arg5[%c2, %c0_12, %c0_13] : memref<9x1x256xf32, #tpu.memory_space<vmem>>, vector<1x1x256xf32>
    %25 = vector.shape_cast %24 : vector<1x1x256xf32> to vector<1x256xf32>
    %26 = vector.broadcast %25 : vector<1x256xf32> to vector<4x256xf32>
    %27 = arith.mulf %23, %26 : vector<4x256xf32>
    %c1_i32 = arith.constant 1 : i32
    %28 = tpu.dynamic_rotate %12 by %c1_i32 dim 1 : vector<4x256xf32>, i32 -> vector<4x256xf32>
    %c3 = arith.constant 3 : index
    %c0_14 = arith.constant 0 : index
    %c0_15 = arith.constant 0 : index
    %29 = vector.load %arg5[%c3, %c0_14, %c0_15] : memref<9x1x256xf32, #tpu.memory_space<vmem>>, vector<1x1x256xf32>
    %30 = vector.shape_cast %29 : vector<1x1x256xf32> to vector<1x256xf32>
    %31 = vector.broadcast %30 : vector<1x256xf32> to vector<4x256xf32>
    %32 = arith.mulf %28, %31 : vector<4x256xf32>
    %c255_i32 = arith.constant 255 : i32
    %33 = tpu.dynamic_rotate %12 by %c255_i32 dim 1 : vector<4x256xf32>, i32 -> vector<4x256xf32>
    %c5 = arith.constant 5 : index
    %c0_16 = arith.constant 0 : index
    %c0_17 = arith.constant 0 : index
    %34 = vector.load %arg5[%c5, %c0_16, %c0_17] : memref<9x1x256xf32, #tpu.memory_space<vmem>>, vector<1x1x256xf32>
    %35 = vector.shape_cast %34 : vector<1x1x256xf32> to vector<1x256xf32>
    %36 = vector.broadcast %35 : vector<1x256xf32> to vector<4x256xf32>
    %37 = arith.mulf %33, %36 : vector<4x256xf32>
    %c241_i32 = arith.constant 241 : i32
    %38 = tpu.dynamic_rotate %12 by %c241_i32 dim 1 : vector<4x256xf32>, i32 -> vector<4x256xf32>
    %c6 = arith.constant 6 : index
    %c0_18 = arith.constant 0 : index
    %c0_19 = arith.constant 0 : index
    %39 = vector.load %arg5[%c6, %c0_18, %c0_19] : memref<9x1x256xf32, #tpu.memory_space<vmem>>, vector<1x1x256xf32>
    %40 = vector.shape_cast %39 : vector<1x1x256xf32> to vector<1x256xf32>
    %41 = vector.broadcast %40 : vector<1x256xf32> to vector<4x256xf32>
    %42 = arith.mulf %38, %41 : vector<4x256xf32>
    %c240_i32 = arith.constant 240 : i32
    %43 = tpu.dynamic_rotate %12 by %c240_i32 dim 1 : vector<4x256xf32>, i32 -> vector<4x256xf32>
    %c7 = arith.constant 7 : index
    %c0_20 = arith.constant 0 : index
    %c0_21 = arith.constant 0 : index
    %44 = vector.load %arg5[%c7, %c0_20, %c0_21] : memref<9x1x256xf32, #tpu.memory_space<vmem>>, vector<1x1x256xf32>
    %45 = vector.shape_cast %44 : vector<1x1x256xf32> to vector<1x256xf32>
    %46 = vector.broadcast %45 : vector<1x256xf32> to vector<4x256xf32>
    %47 = arith.mulf %43, %46 : vector<4x256xf32>
    %c239_i32 = arith.constant 239 : i32
    %48 = tpu.dynamic_rotate %12 by %c239_i32 dim 1 : vector<4x256xf32>, i32 -> vector<4x256xf32>
    %c8 = arith.constant 8 : index
    %c0_22 = arith.constant 0 : index
    %c0_23 = arith.constant 0 : index
    %49 = vector.load %arg5[%c8, %c0_22, %c0_23] : memref<9x1x256xf32, #tpu.memory_space<vmem>>, vector<1x1x256xf32>
    %50 = vector.shape_cast %49 : vector<1x1x256xf32> to vector<1x256xf32>
    %51 = vector.broadcast %50 : vector<1x256xf32> to vector<4x256xf32>
    %52 = arith.mulf %48, %51 : vector<4x256xf32>
    %53 = tpu.concatenate %17, %22, %27, %32, %12, %37, %42, %47, %52 in 0 : vector<4x256xf32>, vector<4x256xf32>, vector<4x256xf32>, vector<4x256xf32>, vector<4x256xf32>, vector<4x256xf32>, vector<4x256xf32>, vector<4x256xf32>, vector<4x256xf32> -> vector<36x256xf32>
    %c0_24 = arith.constant 0 : index
    %c0_25 = arith.constant 0 : index
    %54 = vector.load %arg4[%c0_24, %c0_25] : memref<8x36xf32, #tpu.memory_space<vmem>>, vector<8x36xf32>
    %cst_26 = arith.constant dense<0.000000e+00> : vector<8x256xf32>
    %55 = tpu.matmul %54, %53, %cst_26 {dimension_numbers = #tpu.dot_dimension_numbers<[1], [0], [0], [1], [0, 0, 1, 1], [], []>} : vector<8x36xf32>, vector<36x256xf32>, vector<8x256xf32> -> vector<8x256xf32>
    %c0_27 = arith.constant 0 : index
    %c0_28 = arith.constant 0 : index
    %c0_29 = arith.constant 0 : index
    %56 = vector.load %arg6[%c0_27, %c0_28, %c0_29] : memref<1x8x256xf32, #tpu.memory_space<vmem>>, vector<1x8x256xf32>
    %57 = vector.shape_cast %56 : vector<1x8x256xf32> to vector<8x256xf32>
    %58 = vector.shape_cast %55 : vector<8x256xf32> to vector<1x8x256xf32>
    tpu.vector_store %arg6[%c0_27, %c0_28, %c0_29], %58 {strides = array<i32>} : memref<1x8x256xf32, #tpu.memory_space<vmem>>, vector<1x8x256xf32>,
    %cst_30 = arith.constant dense<0.000000e+00> : vector<8xf32>
    %59 = vector.multi_reduction <add>, %55, %cst_30 [1] : vector<8x256xf32> to vector<8xf32>
    %60 = vector.shape_cast %59 : vector<8xf32> to vector<8x1xf32>
    %c0_31 = arith.constant 0 : index
    %c0_32 = arith.constant 0 : index
    %c0_33 = arith.constant 0 : index
    %61 = vector.load %arg7[%c0_31, %c0_32, %c0_33] : memref<1x8x1xf32, #tpu.memory_space<vmem>>, vector<1x8x1xf32>
    %62 = vector.shape_cast %61 : vector<1x8x1xf32> to vector<8x1xf32>
    %63 = vector.shape_cast %60 : vector<8x1xf32> to vector<1x8x1xf32>
    tpu.vector_store %arg7[%c0_31, %c0_32, %c0_33], %63 {strides = array<i32>} : memref<1x8x1xf32, #tpu.memory_space<vmem>>, vector<1x8x1xf32>,
    %64 = arith.mulf %55, %55 : vector<8x256xf32>
    %cst_34 = arith.constant dense<0.000000e+00> : vector<8xf32>
    %65 = vector.multi_reduction <add>, %64, %cst_34 [1] : vector<8x256xf32> to vector<8xf32>
    %66 = vector.shape_cast %65 : vector<8xf32> to vector<8x1xf32>
    %c0_35 = arith.constant 0 : index
    %c0_36 = arith.constant 0 : index
    %c0_37 = arith.constant 0 : index
    %67 = vector.load %arg8[%c0_35, %c0_36, %c0_37] : memref<1x8x1xf32, #tpu.memory_space<vmem>>, vector<1x8x1xf32>
    %68 = vector.shape_cast %67 : vector<1x8x1xf32> to vector<8x1xf32>
    %69 = vector.shape_cast %66 : vector<8x1xf32> to vector<1x8x1xf32>
    tpu.vector_store %arg8[%c0_35, %c0_36, %c0_37], %69 {strides = array<i32>} : memref<1x8x1xf32, #tpu.memory_space<vmem>>, vector<1x8x1xf32>,
    return
  }
  func.func @transform_0(%arg0: i32) -> (i32, i32, i32) {
    %c0_i32 = arith.constant 0 : i32
    %c0_i32_0 = arith.constant 0 : i32
    %c0_i32_1 = arith.constant 0 : i32
    return %arg0, %c0_i32, %c0_i32_0 : i32, i32, i32
  }
  func.func @transform_1(%arg0: i32) -> (i32, i32) {
    %c0_i32 = arith.constant 0 : i32
    %c0_i32_0 = arith.constant 0 : i32
    %c0_i32_1 = arith.constant 0 : i32
    return %c0_i32, %c0_i32_0 : i32, i32
  }
  func.func @transform_2(%arg0: i32) -> (i32, i32) {
    %c0_i32 = arith.constant 0 : i32
    %c0_i32_0 = arith.constant 0 : i32
    %c0_i32_1 = arith.constant 0 : i32
    return %c0_i32, %c0_i32_0 : i32, i32
  }
  func.func @transform_3(%arg0: i32) -> (i32, i32) {
    %c0_i32 = arith.constant 0 : i32
    %c0_i32_0 = arith.constant 0 : i32
    %c0_i32_1 = arith.constant 0 : i32
    return %c0_i32, %c0_i32_0 : i32, i32
  }
  func.func @transform_4(%arg0: i32) -> (i32, i32, i32) {
    %c0_i32 = arith.constant 0 : i32
    %c0_i32_0 = arith.constant 0 : i32
    %c0_i32_1 = arith.constant 0 : i32
    %c0_i32_2 = arith.constant 0 : i32
    return %c0_i32, %c0_i32_0, %c0_i32_1 : i32, i32, i32
  }
  func.func @transform_5(%arg0: i32) -> (i32, i32, i32) {
    %c0_i32 = arith.constant 0 : i32
    %c0_i32_0 = arith.constant 0 : i32
    %c0_i32_1 = arith.constant 0 : i32
    return %arg0, %c0_i32, %c0_i32_0 : i32, i32, i32
  }
  func.func @transform_6(%arg0: i32) -> (i32, i32, i32) {
    %c0_i32 = arith.constant 0 : i32
    %c0_i32_0 = arith.constant 0 : i32
    %c0_i32_1 = arith.constant 0 : i32
    return %arg0, %c0_i32, %c0_i32_0 : i32, i32, i32
  }
  func.func @transform_7(%arg0: i32) -> (i32, i32, i32) {
    %c0_i32 = arith.constant 0 : i32
    %c0_i32_0 = arith.constant 0 : i32
    %c0_i32_1 = arith.constant 0 : i32
    return %arg0, %c0_i32, %c0_i32_0 : i32, i32, i32
  }
}

</mosaic_0001>

<bundles_post_ra>
// kernel: resblock.5
= control target key start
LH: loop header
LB: loop body
LE: loop exit
PB: predicated region body
PF: predicated region fallthrough
CT: control target
= control target key end

     0   :  { %s375_s15 = smov 0   ;;  %s401_s0 = inlined_call_operand.vmem [shape: f32[2,8,256], index: 0, kind: input, shape index: {}]   ;;  %s402_s1 = inlined_call_operand.vmem [shape: f32[2,8,256], index: 1, kind: input, shape index: {}]   ;;  %s403_s2 = inlined_call_operand.vmem [shape: f32[8,1], index: 2, kind: input, shape index: {}]   ;;  %s404_s3 = inlined_call_operand.vmem [shape: f32[8,1], index: 3, kind: input, shape index: {}]   ;;  %s405_s4 = inlined_call_operand.vmem [shape: f32[2,8,256], index: 4, kind: output, shape index: {}]  }
   0x1 LB: > { %s315_s16 = sadd.s32 4294967295, %s347_s15   ;;  %p319_p0 = scmp.ge.s32.totalorder %s347_s15, 1  ;;  %s347_s15 = sphi %s375_s15, %s14_s15  }
   0x2   : > { %p172_p1 = scmp.lt.s32.totalorder %s347_s15, 3 }
   0x4   : > { %p173_p2 = pnand %p319_p0, %p172_p1 }
   0x5   : > { %p203_p3 = scmp.lt.s32.totalorder (!%p173_p2), %s315_s16, 1 }
   0x6   : > { %176 = sbr.rel (%p173_p2) target bundleno = 149 (0x95), region = 36 }
   0xb   : > { %v220_v0 = vld [vmem:[%s403_s2] sm:$0xff]  ;;  %v349_v1 = vmov 0   ;;  %s407_s16 = smov (!%p203_p3, %s315_s16), 1 }
   0xc   : > { %340 = vset.pattern.permute.xlu0 %v349_v1  ;;  %v228_v2 = vld [vmem:[%s404_s3] sm:$0xff]  ;;  %s328_s21 = sshll.u32 %s407_s16, 4 }
   0xd   : > { %223 = vperm.xlu0 %340, %v220_v0   ;;  %s207_s24 = scalar_lea.vmem %s401_s0, %s328_s21  ;;  %s212_s27 = scalar_lea.vmem %s402_s1, %s328_s21 }
   0xe   : > { %v218_v4 = vld [vmem:[%s207_s24] sm:$0xff]  ;;  %v219_v5 = vld [vmem:[%s207_s24 + $0x8] sm:$0xff]  ;;  %s217_s30 = scalar_lea.vmem %s405_s4, %s328_s21 }
   0xf   : > { %v242_v11 = vld [vmem:[%s212_s27] sm:$0xff]  ;;  %v243_v12 = vld [vmem:[%s212_s27 + $0x8] sm:$0xff] }
  0x11   : > { %231 = vperm.xlu0 %340, %v228_v2  }
  0x88   : > { %v224_v3 = vpop.permute.xlu0 %223 }
  0x89   : > { %v226_v6 = vmul.f32 %v224_v3, %v218_v4  ;;  %v227_v7 = vmul.f32 %v224_v3, %v219_v5 }
  0x8c   : > { %v232_v8 = vpop.permute.xlu0 %231 }
  0x8d   : > { %v234_v9 = vadd.f32 %v232_v8, %v226_v6  ;;  %v235_v10 = vadd.f32 %v232_v8, %v227_v7 }
  0x8f   : > { %vm236_vm0 = vcmp.gt.f32.partialorder %v234_v9, 0.0  ;;  %vm237_vm1 = vcmp.gt.f32.partialorder %v235_v10, 0.0  ;;  %v238_v13 = vmul.f32 0.1, %v234_v9  ;;  %v239_v14 = vmul.f32 0.1, %v235_v10 }
  0x91   : > { %v240_v15 = vsel %vm236_vm0, %v234_v9, %v238_v13  ;;  %v241_v16 = vsel %vm237_vm1, %v235_v10, %v239_v14 }
  0x92   : > { %v244_v17 = vadd.f32 %v242_v11, %v240_v15  ;;  %v245_v18 = vadd.f32 %v243_v12, %v241_v16 }
  0x94   : > { %246 = vst [vmem:[%s217_s30] sm:$0xff] %v244_v17  ;;  %247 = vst [vmem:[%s217_s30 + $0x8] sm:$0xff] %v245_v18 }
  0x95 PF: > { %s14_s15 = sadd.s32 1, %s347_s15  }
  0x96   : > { %p11_p4 = scmp.ge.s32.totalorder %s14_s15, 4  }
  0x98   :  { %13 = sbr.rel (!%p11_p4) target bundleno = 1 (0x1), region = 69 }

// kernel: resblock.3
= control target key start
LH: loop header
LB: loop body
LE: loop exit
PB: predicated region body
PF: predicated region fallthrough
CT: control target
= control target key end

     0   :  { %s494_s15 = smov 0   ;;  %s525_s0 = inlined_call_operand.vmem [shape: f32[2,8,256], index: 0, kind: input, shape index: {}]   ;;  %s526_s1 = inlined_call_operand.vmem [shape: f32[4,8], index: 1, kind: input, shape index: {}]   ;;  %s527_s2 = inlined_call_operand.vmem [shape: f32[2,4,256], index: 2, kind: output, shape index: {0}]   ;;  %s528_s3 = inlined_call_operand.vmem [shape: f32[2,4,1], index: 3, kind: output, shape index: {1}]   ;;  %s529_s4 = inlined_call_operand.vmem [shape: f32[2,4,1], index: 4, kind: output, shape index: {2}]  }
   0x1 LB: > { %s435_s16 = sadd.s32 4294967295, %s466_s15   ;;  %p439_p0 = scmp.ge.s32.totalorder %s466_s15, 1  ;;  %s466_s15 = sphi %s494_s15, %s15_s15  }
   0x2   : > { %p167_p1 = scmp.lt.s32.totalorder %s466_s15, 3 }
   0x4   : > { %p168_p2 = pnand %p439_p0, %p167_p1 }
   0x5   : > { %p201_p3 = scmp.lt.s32.totalorder (!%p168_p2), %s435_s16, 1 }
   0x6   : > { %171 = sbr.rel (%p168_p2) target bundleno = 358 (0x166), region = 28 }
   0xb   : > { %v468_v0 = vmov 0.0   ;;  %s531_s16 = smov (!%p201_p3, %s435_s16), 1  ;;  %v219_v3 = vld [vmem:[%s526_s1] sm:$0xf]  ;;  %vm222_vm0 = vcmask 64512   ;;  %vm302_vm1 = vcmask 1043456  }
   0xc   : > { %290 = vmatprep.mubr.f32.mxu0 %v468_v0  ;;  %s449_s17 = sshll.u32 %s531_s16, 4  ;;  %s450_s23 = sshll.u32 %s531_s16, 3  ;;  %vm308_vm2 = vcmask 3072  }
   0xd   : > { %s205_s20 = scalar_lea.vmem %s525_s0, %s449_s17  ;;  %s210_s26 = scalar_lea.vmem %s527_s2, %s450_s23 }
   0xe   : > { %v221_v1 = vld [vmem:[%s205_s20 + $0x8] sm:$0xff]  ;;  %v220_v2 = vld [vmem:[%s205_s20] sm:$0xff]  ;;  %s444_s27 = sshll.u32 %s531_s16, 2 }
   0xf   : > { %256 = vmatprep.subr.mxu0 %v221_v1  ;;  %s214_s30 = scalar_lea.vmem %s528_s3, %s444_s27  ;;  %s218_s7 = scalar_lea.vmem %s529_s4, %s444_s27 }
  0x10   : > { %257 = vmatpush1.msra.mxu0 %v220_v2 }
  0x11   : > { %446 = vmatmul.mubr.msk.f32.vlgmr.msra.gmra.mxu0 %vm222_vm0, %v219_v3 }
  0xd1   : > { %v292_v4 = vpop.f32.mrf.mxu0 }
  0xd2   : > { %v310_v5 = vmul.f32 %v292_v4, %v292_v4  ;;  %v303_v9 = vsel %vm302_vm1, %v292_v4, 0.0 }
  0xd3   : > { %v294_v6 = vpop.f32.mrf.mxu0 }
  0xd4   : > { %v299_v7 = vcombine.low %v292_v4, %v294_v6  ;;  %v311_v8 = vmul.f32 %v294_v6, %v294_v6  ;;  %v304_v10 = vsel %vm302_vm1, %v294_v6, 0.0  ;;  %v312_v13 = vsel %vm302_vm1, %v310_v5, 0.0 }
  0xd5   : > { %v305_v11 = vadd.f32 %v304_v10, %v303_v9 }
  0xd6   : > { %301 = vst [vmem:[%s210_s26] sm:$0xff] %v299_v7  ;;  %v313_v12 = vsel %vm302_vm1, %v311_v8, 0.0 }
  0xd7   : > { %306 = vadd.xlane.f32.xlu0 %v305_v11  ;;  %v314_v14 = vadd.f32 %v313_v12, %v312_v13 }
  0xdb   : > { %315 = vadd.xlane.f32.xlu0 %v314_v14 }
 0x160   : > { %v307_v15 = vpop.xlane.xlu0 %306 }
 0x161   : > { %309 = vst.msk [vmem:[%s214_s30] sm:$0xf] %vm308_vm2, %v307_v15 }
 0x164   : > { %v316_v16 = vpop.xlane.xlu0 %315 }
 0x165   : > { %317 = vst.msk [vmem:[%s218_s7] sm:$0xf] %vm308_vm2, %v316_v16 }
 0x166 PF: > { %s15_s15 = sadd.s32 1, %s466_s15  }
 0x167   : > { %p12_p4 = scmp.ge.s32.totalorder %s15_s15, 4  }
 0x169   :  { %14 = sbr.rel (!%p12_p4) target bundleno = 1 (0x1), region = 82 }

// kernel: resblock.4
= control target key start
LH: loop header
LB: loop body
LE: loop exit
PB: predicated region body
PF: predicated region fallthrough
CT: control target
= control target key end

     0   :  { %s861_s24 = smov 0   ;;  %s994_s0 = inlined_call_operand.vmem [shape: f32[2,4,256], index: 0, kind: input, shape index: {}]   ;;  %s995_s1 = inlined_call_operand.vmem [shape: f32[4,1], index: 1, kind: input, shape index: {}]   ;;  %s996_s2 = inlined_call_operand.vmem [shape: f32[4,1], index: 2, kind: input, shape index: {}]   ;;  %s997_s3 = inlined_call_operand.vmem [shape: f32[8,36], index: 3, kind: input, shape index: {}]   ;;  %s998_s4 = inlined_call_operand.vmem [shape: f32[9,1,256], index: 4, kind: input, shape index: {}]   ;;  %s999_s5 = inlined_call_operand.vmem [shape: f32[2,8,256], index: 5, kind: output, shape index: {0}]   ;;  %s1000_s6 = inlined_call_operand.vmem [shape: f32[2,8,1], index: 6, kind: output, shape index: {1}]   ;;  %s1001_s7 = inlined_call_operand.vmem [shape: f32[2,8,1], index: 7, kind: output, shape index: {2}]  }
   0x1 LB: > { %s757_s25 = sadd.s32 4294967295, %s808_s24   ;;  %p761_p0 = scmp.ge.s32.totalorder %s808_s24, 1  ;;  %s808_s24 = sphi %s861_s24, %s18_s24  }
   0x2   : > { %p242_p1 = scmp.lt.s32.totalorder %s808_s24, 3 }
   0x4   : > { %p243_p2 = pnand %p761_p0, %p242_p1 }
   0x5   : > { %p282_p3 = scmp.lt.s32.totalorder (!%p243_p2), %s757_s25, 1  ;;  %s812_s11 = smov (!%p243_p2), 111  }
   0x6   : > { %246 = sbr.rel (%p243_p2) target bundleno = 639 (0x27f), region = 40  ;;  %s813_s12 = smov (!%p243_p2), 112  }
   0x7   : > { %s814_s13 = smov (!%p243_p2), 127   ;;  %s815_s14 = smov (!%p243_p2), 113  }
   0x8   : > { %s816_s15 = smov (!%p243_p2), 1   ;;  %s817_s16 = smov (!%p243_p2), 16  }
   0x9   : > { %s818_s17 = smov (!%p243_p2), 15   ;;  %s819_s18 = smov (!%p243_p2), 17  }
   0xb   : > { %v301_v0 = vld [vmem:[%s995_s1] sm:$0xf]  ;;  %v810_v1 = vmov 0   ;;  %v811_v3 = vmov 839922192   ;;  %v309_v5 = vlaneseq  ;;  %s1003_s25 = smov (!%p282_p3, %s757_s25), 1 }
   0xc   : > { %801 = vset.pattern.permute.xlu0 %v810_v1  ;;  %v315_v2 = vld [vmem:[%s996_s2] sm:$0xf]  ;;  %v307_v4 = vunpack.c.l.s4 %v811_v3  ;;  %s878_s30 = sshll.u32 %s1003_s25, 3  ;;  %v820_v19 = vmov 0.0   ;;  %v773_v23 = vld [vmem:[%s998_s4 + $0xe] sm:$0x3] }
   0xd   : > { %304 = vperm.xlu0 %801, %v301_v0   ;;  %v310_v7 = vshrl.u32 %v309_v5, 7  ;;  %s286_s10 = scalar_lea.vmem %s994_s0, %s878_s30  ;;  %620 = vmatprep.mubr.f32.mxu0 %v820_v19  ;;  %v906_v20 = vand.u32 127, %v309_v5  ;;  %v774_v28 = vld [vmem:[%s998_s4 + $0x10] sm:$0x3]  ;;  %v771_v37 = vld [vmem:[%s998_s4 + $0xa] sm:$0x3]  ;;  %s295_s23 = scalar_lea.vmem %s1000_s6, %s878_s30 }
   0xe   : > { %v308_v6 = vunpack.c.0.s8 %v307_v4  ;;  %v300_v11 = vld [vmem:[%s286_s10] sm:$0xff]  ;;  %vm536_vm3 = vcmask 1043456   ;;  %v772_v46 = vld [vmem:[%s998_s4 + $0xc] sm:$0x3]  ;;  %vm546_vm10 = vcmask 293888   ;;  %vm632_vm11 = vcmask 7168   ;;  %s299_s27 = scalar_lea.vmem %s1001_s7, %s878_s30 }
   0xf   : > { %v908_v21 = vsub.s32 0, %v310_v7  ;;  %v910_v22 = vsub.s32 1, %v310_v7  ;;  %vm472_vm1 = vcmp.lt.s32.totalorder %v906_v20, 112  ;;  %vm494_vm2 = vcmp.lt.s32.totalorder %v906_v20, 111  ;;  %v770_v50 = vld [vmem:[%s998_s4 + $0x6] sm:$0x3] }
  0x10   : > { %v311_v8 = vsub.s32 %v308_v6, %v310_v7  ;;  %vm428_vm4 = vcmp.lt.s32.totalorder %v906_v20, 127  ;;  %vm450_vm5 = vcmp.lt.s32.totalorder %v906_v20, 113  ;;  %vm406_vm6 = vcmp.lt.s32.totalorder %v906_v20, 1 }
  0x11   : > { %318 = vperm.xlu0 %801, %v315_v2   ;;  %v481_v26 = vrot.slane %v773_v23, %v908_v21  ;;  %v485_v27 = vrot.slane %v773_v23, %v910_v22  ;;  %v503_v35 = vrot.slane %v774_v28, %v908_v21  ;;  %v507_v36 = vrot.slane %v774_v28, %v910_v22  ;;  %v768_v2 = vld [vmem:[%s998_s4 + $0x2] sm:$0x3] }
  0x12   : > { %v437_v44 = vrot.slane %v771_v37, %v908_v21  ;;  %v441_v45 = vrot.slane %v771_v37, %v910_v22  ;;  %v459_v54 = vrot.slane %v772_v46, %v908_v21  ;;  %v463_v55 = vrot.slane %v772_v46, %v910_v22 }
  0x13   : > { %v415_v57 = vrot.slane %v770_v50, %v908_v21  ;;  %v419_v61 = vrot.slane %v770_v50, %v910_v22  ;;  %vm362_vm7 = vcmp.lt.s32.totalorder %v906_v20, 16  ;;  %vm384_vm8 = vcmp.lt.s32.totalorder %v906_v20, 15 }
  0x14   : > { %vm341_vm9 = vcmp.lt.s32.totalorder %v906_v20, 17 }
  0x88   : > { %v305_v9 = vpop.permute.xlu0 %304 }
  0x89   : > { %v312_v10 = vrot.slane %v305_v9, %v311_v8 }
  0x8b   : > { %v314_v13 = vmul.f32 %v312_v10, %v300_v11  ;;  %v371_v10 = vrot.slane %v768_v2, %v908_v21 }
  0x8c   : > { %v319_v12 = vpop.permute.xlu0 %318 }
  0x8d   : > { %v326_v14 = vrot.slane %v319_v12, %v311_v8 }
  0x8f   : > { %v328_v15 = vadd.f32 %v326_v14, %v314_v13  ;;  %v375_v14 = vrot.slane %v768_v2, %v910_v22 }
  0x91   : > { %vm329_vm0 = vcmp.gt.f32.partialorder %v328_v15, 0.0  ;;  %v330_v16 = vmul.f32 0.1, %v328_v15 }
  0x93   : > { %v884_v17 = vsel %vm329_vm0, %v328_v15, %v330_v16  ;;  %v769_v16 = vld [vmem:[%s998_s4 + $0x4] sm:$0x3] }
  0x94   : > { %490 = vrot.lane.b32.xlu0 %v884_v17, %s812_s11  ;;  %468 = vrot.lane.b32.xlu1 %v884_v17, %s813_s12  ;;  %v890_v18 = vcombine.high %v884_v17, %v884_v17  ;;  %v397_v28 = vrot.slane %v769_v16, %v910_v22 }
  0x98   : > { %424 = vrot.lane.b32.xlu0 %v884_v17, %s814_s13  ;;  %470 = vrot.lane.b32.xlu1 %v890_v18, %s813_s12 }
  0x9c   : > { %446 = vrot.lane.b32.xlu0 %v884_v17, %s815_s14  ;;  %492 = vrot.lane.b32.xlu1 %v890_v18, %s812_s11 }
  0xa0   : > { %402 = vrot.lane.b32.xlu0 %v884_v17, %s816_s15  ;;  %426 = vrot.lane.b32.xlu1 %v890_v18, %s814_s13 }
  0xa4   : > { %358 = vrot.lane.b32.xlu0 %v884_v17, %s817_s16  ;;  %448 = vrot.lane.b32.xlu1 %v890_v18, %s815_s14 }
  0xa8   : > { %380 = vrot.lane.b32.xlu0 %v884_v17, %s818_s17  ;;  %404 = vrot.lane.b32.xlu1 %v890_v18, %s816_s15 }
  0xac   : > { %335 = vrot.lane.b32.xlu0 %v884_v17, %s819_s18  ;;  %360 = vrot.lane.b32.xlu1 %v890_v18, %s817_s16 }
  0xb0   : > { %382 = vrot.lane.b32.xlu1 %v890_v18, %s818_s17  ;;  %s781_s17 = sshll.u32 %s1003_s25, 4 }
  0xb1   : > { %s291_s20 = scalar_lea.vmem %s999_s5, %s781_s17 }
  0xb4   : > { %337 = vrot.lane.b32.xlu1 %v890_v18, %s819_s18 }
 0x106   : > { %v491_v24 = vpop.permute.xlu0 %490  ;;  %v469_v25 = vpop.permute.xlu1 %468 }
 0x10a   : > { %v425_v29 = vpop.permute.xlu0 %424  ;;  %v471_v30 = vpop.permute.xlu1 %470 }
 0x10b   : > { %v473_v31 = vsel %vm472_vm1, %v469_v25, %v471_v30  ;;  %v474_v32 = vsel %vm472_vm1, %v471_v30, %v469_v25 }
 0x10c   : > { %v488_v33 = vmul.f32 %v481_v26, %v473_v31  ;;  %v489_v34 = vmul.f32 %v485_v27, %v474_v32 }
 0x10e   : > { %v447_v38 = vpop.permute.xlu0 %446  ;;  %v493_v39 = vpop.permute.xlu1 %492  ;;  %v532_v58 = vrot.slane %v488_v33, 4  ;;  %v533_v62 = vrot.slane %v489_v34, 4 }
 0x10f   : > { %v495_v40 = vsel %vm494_vm2, %v491_v24, %v493_v39  ;;  %v496_v41 = vsel %vm494_vm2, %v493_v39, %v491_v24 }
 0x110   : > { %v510_v42 = vmul.f32 %v503_v35, %v495_v40  ;;  %v511_v43 = vmul.f32 %v507_v36, %v496_v41 }
 0x112   : > { %775 = vmatprep.subr.msk.mxu0 %vm536_vm3, %v511_v43  ;;  %v427_v47 = vpop.permute.xlu1 %426  ;;  %v403_v51 = vpop.permute.xlu0 %402 }
 0x113   : > { %v429_v48 = vsel %vm428_vm4, %v425_v29, %v427_v47  ;;  %v430_v49 = vsel %vm428_vm4, %v427_v47, %v425_v29  ;;  %776 = vmatpush1.msk.msra.mxu0 %vm536_vm3, %v510_v42  ;;  %v545_v47 = vld [vmem:[%s997_s3] sm:$0xff] }
 0x114   : > { %v444_v52 = vmul.f32 %v437_v44, %v429_v48  ;;  %v445_v53 = vmul.f32 %v441_v45, %v430_v49 }
 0x116   : > { %v449_v56 = vpop.permute.xlu1 %448  ;;  %v527_v63 = vrot.slane %v445_v53, 4  ;;  %v526_v3 = vrot.slane %v444_v52, 4  ;;  %v359_v4 = vpop.permute.xlu0 %358 }
 0x117   : > { %v451_v59 = vsel %vm450_vm5, %v447_v38, %v449_v56  ;;  %v452_v60 = vsel %vm450_vm5, %v449_v56, %v447_v38 }
 0x118   : > { %v466_v0 = vmul.f32 %v459_v54, %v451_v59  ;;  %v467_v1 = vmul.f32 %v463_v55, %v452_v60  ;;  %v542_v13 = vsel %vm536_vm3, %v890_v18, %v527_v63  ;;  %v541_v15 = vsel %vm536_vm3, %v884_v17, %v526_v3  ;;  %v344_v17 = vld [vmem:[%s998_s4] sm:$0x3] }
 0x119   : > { %v393_v18 = vrot.slane %v769_v16, %v908_v21  ;;  %v349_v32 = vrot.slane %v344_v17, %v908_v21  ;;  %v353_v33 = vrot.slane %v344_v17, %v910_v22 }
 0x11a   : > { %v405_v5 = vpop.permute.xlu1 %404  ;;  %v544_v6 = vsel %vm536_vm3, %v467_v1, %v533_v62  ;;  %v543_v7 = vsel %vm536_vm3, %v466_v0, %v532_v58  ;;  %v381_v25 = vpop.permute.xlu0 %380 }
 0x11b   : > { %v407_v8 = vsel %vm406_vm6, %v403_v51, %v405_v5  ;;  %v408_v9 = vsel %vm406_vm6, %v405_v5, %v403_v51  ;;  %580 = vmatprep.subr.mxu0 %v544_v6 }
 0x11c   : > { %v422_v11 = vmul.f32 %v415_v57, %v408_v9  ;;  %v423_v12 = vmul.f32 %v419_v61, %v407_v8  ;;  %581 = vmatpush1.msra.mxu0 %v543_v7 }
 0x11d   : > { %582 = vmatprep.subr.mxu0 %v542_v13 }
 0x11e   : > { %583 = vmatpush1.msra.mxu0 %v541_v15  ;;  %v361_v19 = vpop.permute.xlu1 %360  ;;  %v520_v34 = vrot.slane %v422_v11, 4  ;;  %v521_v35 = vrot.slane %v423_v12, 4  ;;  %v336_v38 = vpop.permute.xlu0 %335 }
 0x11f   : > { %v363_v23 = vsel %vm362_vm7, %v359_v4, %v361_v19  ;;  %v364_v24 = vsel %vm362_vm7, %v361_v19, %v359_v4 }
 0x120   : > { %v378_v26 = vmul.f32 %v371_v10, %v364_v24  ;;  %v379_v27 = vmul.f32 %v375_v14, %v363_v23 }
 0x122   : > { %v383_v29 = vpop.permute.xlu1 %382  ;;  %v514_v20 = vrot.slane %v378_v26, 4  ;;  %v515_v44 = vrot.slane %v379_v27, 4 }
 0x123   : > { %v385_v30 = vsel %vm384_vm8, %v381_v25, %v383_v29  ;;  %v386_v31 = vsel %vm384_vm8, %v383_v29, %v381_v25 }
 0x124   : > { %v400_v36 = vmul.f32 %v393_v18, %v386_v31  ;;  %v401_v37 = vmul.f32 %v397_v28, %v385_v30 }
 0x126   : > { %v338_v39 = vpop.permute.xlu1 %337  ;;  %v540_v40 = vsel %vm536_vm3, %v401_v37, %v521_v35  ;;  %v539_v41 = vsel %vm536_vm3, %v400_v36, %v520_v34 }
 0x127   : > { %v342_v42 = vsel %vm341_vm9, %v336_v38, %v338_v39  ;;  %v343_v43 = vsel %vm341_vm9, %v338_v39, %v336_v38  ;;  %584 = vmatprep.subr.mxu0 %v540_v40 }
 0x128   : > { %v356_v45 = vmul.f32 %v349_v32, %v343_v43  ;;  %v357_v21 = vmul.f32 %v353_v33, %v342_v42  ;;  %585 = vmatpush1.msra.mxu0 %v539_v41 }
 0x12a   : > { %v538_v22 = vsel %vm536_vm3, %v357_v21, %v515_v44  ;;  %v537_v46 = vsel %vm536_vm3, %v356_v45, %v514_v20 }
 0x12b   : > { %586 = vmatprep.subr.mxu0 %v538_v22 }
 0x12c   : > { %587 = vmatpush1.msra.mxu0 %v537_v46 }
 0x12d   : > { %777 = vmatmul.mubr.msk.f32.vlgmr.msra.gmra.mxu0 %vm546_vm10, %v545_v47 }
 0x1ed   : > { %v622_v48 = vpop.f32.mrf.mxu0 }
 0x1ee   : > { %627 = vst [vmem:[%s291_s20] sm:$0xff] %v622_v48  ;;  %v634_v52 = vmul.f32 %v622_v48, %v622_v48 }
 0x1ef   : > { %v624_v49 = vpop.f32.mrf.mxu0 }
 0x1f0   : > { %628 = vst [vmem:[%s291_s20 + $0x8] sm:$0xff] %v624_v49  ;;  %v635_v50 = vmul.f32 %v624_v49, %v624_v49  ;;  %v629_v51 = vadd.f32 %v624_v49, %v622_v48 }
 0x1f2   : > { %630 = vadd.xlane.f32.xlu0 %v629_v51  ;;  %v636_v53 = vadd.f32 %v635_v50, %v634_v52 }
 0x1f4   : > { %637 = vadd.xlane.f32.xlu1 %v636_v53 }
 0x27b   : > { %v631_v54 = vpop.xlane.xlu0 %630 }
 0x27c   : > { %633 = vst.msk [vmem:[%s295_s23] sm:$0xff] %vm632_vm11, %v631_v54 }
 0x27d   : > { %v638_v55 = vpop.xlane.xlu1 %637 }
 0x27e   : > { %639 = vst.msk [vmem:[%s299_s27] sm:$0xff] %vm632_vm11, %v638_v55 }
 0x27f PF: > { %s18_s24 = sadd.s32 1, %s808_s24  }
 0x280   : > { %p15_p4 = scmp.ge.s32.totalorder %s18_s24, 4  }
 0x282   :  { %17 = sbr.rel (!%p15_p4) target bundleno = 1 (0x1), region = 101 }

</bundles_post_ra>
